<compile_context>
chip_gen: v7x
topology: tpu7x:2x2x1
jax: 0.10.0
libtpu: 0.0.40
codegen_flags: <defaults>
</compile_context>

<pallas_src>
import functools

import jax
import jax.numpy as jnp
from jax.experimental import pallas as pl
from jax.experimental.pallas import tpu as pltpu


def _identity_dma_kernel(x_hbm, o_hbm, sems, *, n_chunks, chunk):
    # Pure HBM->HBM bulk copy: start all chunk DMAs, then wait on all of them.
    copies = []
    for c in range(n_chunks):  # static unroll; n_chunks is tiny (1, 2, or 4)
        cp = pltpu.make_async_copy(
            x_hbm.at[pl.ds(c * chunk, chunk)],
            o_hbm.at[pl.ds(c * chunk, chunk)],
            sems.at[c],
        )
        cp.start()
        copies.append(cp)
    for cp in copies:
        cp.wait()


def feature_map_act(x: jnp.ndarray, eps: float = 1e-12) -> jnp.ndarray:
    """Pallas implementation of FeatureMapAct.forward (identity).

    x: (batch_size, n_heads, seq_len, head_dim)
    eps is unused in the forward pass (kept for signature parity).
    """
    # TODO(synk): in production just `return x` (or fuse into the neighbouring
    # GLA kernel) — even a perfect copy kernel cannot beat not copying at all.
    if x.size == 0:
        return x

    itemsize = jnp.dtype(x.dtype).itemsize
    total_bytes = x.size * itemsize
    dim0 = x.shape[0]

    # Split into a few concurrent DMAs along the leading axis when the tensor
    # is large enough (>= ~4 MiB per chunk) and the axis divides evenly.
    n_chunks = 1
    for cand in (4, 2):
        if dim0 % cand == 0 and total_bytes // cand >= (4 << 20):
            n_chunks = cand
            break
    chunk = dim0 // n_chunks

    kernel = functools.partial(_identity_dma_kernel, n_chunks=n_chunks, chunk=chunk)

    return pl.pallas_call(
        kernel,
        out_shape=jax.ShapeDtypeStruct(x.shape, x.dtype),
        in_specs=[pl.BlockSpec(memory_space=pl.ANY)],
        out_specs=pl.BlockSpec(memory_space=pl.ANY),
        scratch_shapes=[pltpu.SemaphoreType.DMA((n_chunks,))],
    )(x)


if __name__ == "__main__":
    key = jax.random.PRNGKey(0)
    # (batch_size, n_heads, seq_len, head_dim)
    x = jax.random.normal(key, (2, 4, 8, 32), dtype=jnp.float32)

    out = feature_map_act(x)
    out = jax.block_until_ready(out)

    # Forward is identity: verify exact equality.
    assert out.shape == x.shape
    assert out.dtype == x.dtype
    assert bool(jnp.all(out == x))
    print("KERNEL_OK")
</pallas_src>

<mosaic_0001>
module attributes {stable_mosaic.version = 11 : i64} {
  func.func @_identity_dma_kernel(%arg0: memref<2x4x8x32xf32, #tpu.memory_space<any>>, %arg1: memref<2x4x8x32xf32, #tpu.memory_space<any>>, %arg2: memref<1x!tpu.dma_semaphore, #tpu.memory_space<semaphore_mem>>) attributes {dimension_semantics = [], scalar_prefetch = 0 : i64, scratch_operands = 1 : i64, tpu.core_type = #tpu.core_type<tc>} {
    %c0_i32 = arith.constant 0 : i32
    %c0_i32_0 = arith.constant 0 : i32
    %c0_i32_1 = arith.constant 0 : i32
    %c0_i32_2 = arith.constant 0 : i32
    %c0_i32_3 = arith.constant 0 : i32
    %0 = tpu.memref_slice %arg0[%c0_i32_0, %c0_i32_1, %c0_i32_2, %c0_i32_3] : memref<2x4x8x32xf32, #tpu.memory_space<any>> -> memref<2x4x8x32xf32, #tpu.memory_space<any>>
    %c0_i32_4 = arith.constant 0 : i32
    %c0_i32_5 = arith.constant 0 : i32
    %c0_i32_6 = arith.constant 0 : i32
    %c0_i32_7 = arith.constant 0 : i32
    %1 = tpu.memref_slice %arg1[%c0_i32_4, %c0_i32_5, %c0_i32_6, %c0_i32_7] : memref<2x4x8x32xf32, #tpu.memory_space<any>> -> memref<2x4x8x32xf32, #tpu.memory_space<any>>
    %2 = tpu.memref_slice %arg2[%c0_i32] : memref<1x!tpu.dma_semaphore, #tpu.memory_space<semaphore_mem>> -> memref<1x!tpu.dma_semaphore, #tpu.memory_space<semaphore_mem>>
    %3 = tpu.memref_squeeze %2 : memref<1x!tpu.dma_semaphore, #tpu.memory_space<semaphore_mem>> -> memref<!tpu.dma_semaphore, #tpu.memory_space<semaphore_mem>>
    tpu.enqueue_dma source(%0 : memref<2x4x8x32xf32, #tpu.memory_space<any>>) target(%1 : memref<2x4x8x32xf32, #tpu.memory_space<any>>) target_semaphore(%3 : memref<!tpu.dma_semaphore, #tpu.memory_space<semaphore_mem>>)
    %c0_i32_8 = arith.constant 0 : i32
    %c0_i32_9 = arith.constant 0 : i32
    %c0_i32_10 = arith.constant 0 : i32
    %c0_i32_11 = arith.constant 0 : i32
    %c0_i32_12 = arith.constant 0 : i32
    %4 = tpu.memref_slice %arg0[%c0_i32_9, %c0_i32_10, %c0_i32_11, %c0_i32_12] : memref<2x4x8x32xf32, #tpu.memory_space<any>> -> memref<2x4x8x32xf32, #tpu.memory_space<any>>
    %c0_i32_13 = arith.constant 0 : i32
    %c0_i32_14 = arith.constant 0 : i32
    %c0_i32_15 = arith.constant 0 : i32
    %c0_i32_16 = arith.constant 0 : i32
    %5 = tpu.memref_slice %arg1[%c0_i32_13, %c0_i32_14, %c0_i32_15, %c0_i32_16] : memref<2x4x8x32xf32, #tpu.memory_space<any>> -> memref<2x4x8x32xf32, #tpu.memory_space<any>>
    %6 = tpu.memref_slice %arg2[%c0_i32_8] : memref<1x!tpu.dma_semaphore, #tpu.memory_space<semaphore_mem>> -> memref<1x!tpu.dma_semaphore, #tpu.memory_space<semaphore_mem>>
    %7 = tpu.memref_squeeze %6 : memref<1x!tpu.dma_semaphore, #tpu.memory_space<semaphore_mem>> -> memref<!tpu.dma_semaphore, #tpu.memory_space<semaphore_mem>>
    tpu.wait_dma2 semaphore(%7 : memref<!tpu.dma_semaphore, #tpu.memory_space<semaphore_mem>>) src(%4 : memref<2x4x8x32xf32, #tpu.memory_space<any>>) dst(%5 : memref<2x4x8x32xf32, #tpu.memory_space<any>>)
    return
  }
}

</mosaic_0001>

<bundles_post_ra>
// kernel: tpu_custom_call.1
= control target key start
LH: loop header
LB: loop body
LE: loop exit
PB: predicated region body
PF: predicated region fallthrough
CT: control target
= control target key end

     0   :  { %s36_s6 = smov [#allocation2]   ;;  %s37_s7 = smov [#allocation3]   ;;  %s55_s0 = inlined_call_operand.hbm [shape: f32[2,4,8,32], index: 0, kind: input, shape index: {}]   ;;  %s56_s1 = inlined_call_operand.hbm [shape: f32[2,4,8,32], index: 1, kind: output, shape index: {}]  }
   0x1   :  { %s38_s8 = smov 0  }
   0x2   :  { %18 = dma.general %s55_s0, 1024, %s56_s1, %s36_s6, %s37_s7, [#allocation4], %s38_s8, 0  }
   0x3   :  { %34 = dma.done.wait [#allocation2], 1024 }
   0x4   :  { %35 = vsyncadd [#allocation2], 4294966272 }
   0x5   :  { %24 = vsyncmov [#allocation2] }
   0x8   :  { %s25_s13 = vpop.sfrf %24 }
   0x9   :  { %p30_p0 = scmp.ne.s32.totalorder %s25_s13, 0 }
   0xb   :  { %29 = shalt.err (%p30_p0)  }

</bundles_post_ra>
